<compile_context>
chip_gen: v7x
topology: tpu7x:2x2x1
jax: 0.10.0
libtpu: 0.0.40
codegen_flags: <defaults>
</compile_context>

<pallas_src>
import jax
import jax.numpy as jnp
import numpy as np
from jax import lax
from jax.experimental import pallas as pl
from jax.experimental.pallas import tpu as pltpu

K = 5          # Conv1d kernel size
PAD = K // 2   # padding=2, padding_mode='replicate'


def _block_channels(c):
    # LightCNN1DModel: C -> 2C -> 2C -> C, all with skip connections.
    return [(c, 2 * c), (2 * c, 2 * c), (2 * c, c)]


def _pad8(n):
    return ((n + 7) // 8) * 8


# ----------------------------- kernel construction ---------------------------

def _make_kernel(bt, L, chans, chans_p):
    N = bt * L
    n_blocks = len(chans)
    c_in, c_in_p = chans[0][0], chans_p[0][0]
    c_out = chans[-1][1]

    def kernel(x_ref, w_ref, b_ref, o_ref):
        # ---- per-batch-segment boundary masks (hoisted; reused by all blocks) ----
        pos = lax.broadcasted_iota(jnp.int32, (1, N), 1)
        if (L & (L - 1)) == 0:
            l = pos & (L - 1)              # power-of-two fast path
        else:
            l = pos % L
        is_l0, is_l1 = (l == 0), (l == 1)
        is_lm2, is_lm1 = (l == L - 2), (l == L - 1)

        def cshift(h, d):
            # circular shift along lanes: result[:, p] = h[:, (p + d) % N]
            d = d % N
            if d == 0:
                return h
            return jnp.concatenate([h[:, d:], h[:, :d]], axis=1)

        def stack_taps(h):
            # im2col for Conv1d(k=5, stride=1, pad=2, padding_mode='replicate').
            # Row k*Cp + i, lane p=b*L+l holds h[i, b*L + clip(l+k-2, 0, L-1)];
            # the masks clamp at per-batch segment edges (replicate padding).
            m1, m2 = cshift(h, -1), cshift(h, -2)
            p1, p2 = cshift(h, 1), cshift(h, 2)
            t_m2 = jnp.where(is_l0, h, jnp.where(is_l1, m1, m2))
            t_m1 = jnp.where(is_l0, h, m1)
            t_p1 = jnp.where(is_lm1, h, p1)
            t_p2 = jnp.where(is_lm1, h, jnp.where(is_lm2, p1, p2))
            return jnp.concatenate([t_m2, t_m1, h, t_p1, t_p2], axis=0)

        def pool3(h):
            # AvgPool1d(3, stride=1, padding=1), count_include_pad=True (zero pad),
            # per-batch segment boundaries enforced by the masks.
            left = jnp.where(is_l0, 0.0, cshift(h, -1))
            right = jnp.where(is_lm1, 0.0, cshift(h, 1))
            return (left + h + right) * (1.0 / 3.0)

        # ---- in-VMEM relayout: channels-last (bt, L, C) -> (C_pad, bt*L) ----------
        x2 = x_ref[...].astype(jnp.float32).reshape(N, c_in)
        if c_in_p > c_in:
            x2 = jnp.concatenate(
                [x2, jnp.zeros((N, c_in_p - c_in), jnp.float32)], axis=1)
        h = jnp.transpose(x2, (1, 0))                                  # (C_pad, N) f32

        woff = 0
        boff = 0
        for blk in range(n_blocks):
            ci, co = chans[blk]
            ci_p, co_p = chans_p[blk]
            # fused, BN-folded parameters (loaded ONCE per grid step; 8-row aligned)
            wab = w_ref[woff:woff + 2 * co_p, :K * ci_p]               # conv_a + 1x1 skip
            woff += 2 * co_p
            wb = w_ref[woff:woff + co_p, :K * co_p]                    # conv_b
            woff += co_p
            ba = b_ref[boff:boff + co_p, 0:1]                          # conv_a(+BN) bias
            bbd = b_ref[boff:boff + co_p, 1:2]                         # conv_b + skip bias
            boff += co_p

            # conv_a (+ fused 1x1 skip): ONE bf16 MXU matmul, f32 accumulate,
            # batch folded into the N (lane) dimension of the RHS.
            st = stack_taps(h).astype(jnp.bfloat16)                    # (K*ci_p, bt*L)
            z = jnp.dot(wab, st, preferred_element_type=jnp.float32)   # (2*co_p, bt*L)
            t = jnp.maximum(z[:co_p, :] + ba, 0.0)                     # relu(conv_a+BN)
            skip = z[co_p:, :]                                         # downsample(x)

            # conv_b: ONE bf16 MXU matmul; add skip + folded biases, relu.
            st2 = stack_taps(t).astype(jnp.bfloat16)                   # (K*co_p, bt*L)
            u = jnp.dot(wb, st2, preferred_element_type=jnp.float32)
            h = jnp.maximum(u + skip + bbd, 0.0)

            if blk < n_blocks - 1:                                     # pool after blocks 1, 2
                h = pool3(h)

        # ---- relayout back to channels-last and store -----------------------------
        out = jnp.transpose(h, (1, 0))[:, :c_out]                      # (bt*L, C)
        o_ref[...] = out.reshape(bt, L, c_out).astype(o_ref.dtype)

    return kernel


# ------------------------------- host wrapper --------------------------------

def _choose_batch_tile(B, L):
    """Pick bt so the matmul lane dim (bt*L) stays dense, preferring nb >= 2 grid
    steps (DMA/compute pipelining; v7x 2-TC sharding) when that still leaves
    >= 256 lanes per step.  On v7x with large B*L, pass batch_tile=B//2 explicitly."""
    bt = min(B, max(1, -(-512 // L)))          # ceil(512 / L), capped at B
    while B % bt:
        bt -= 1
    if B // bt < 2:
        for cand in range(bt - 1, 0, -1):
            if B % cand == 0 and cand * L >= 256:
                bt = cand
                break
    return bt


def light_cnn1d(x, w_packed, bias_packed, in_channels, *, batch_tile=None,
                out_dtype=jnp.float32):
    """x: (B, L, C) channels-last, matching LightCNN1DModel.forward()'s input."""
    B, L, C = x.shape
    assert C == in_channels
    chans = _block_channels(C)
    chans_p = [(_pad8(ci), _pad8(co)) for ci, co in chans]

    bt = _choose_batch_tile(B, L) if batch_tile is None else batch_tile
    assert B % bt == 0
    nb = B // bt

    # Activations DMA'd at half width: every use of x inside the kernel is a bf16
    # MXU operand anyway, so this is value-identical and halves the input HBM bytes.
    if x.dtype != jnp.bfloat16:
        x = x.astype(jnp.bfloat16)

    # Advisory cost hint for XLA scheduling around the custom call.
    flops = 2 * B * L * sum(2 * co * K * ci + co * K * co for ci, co in chans)
    bytes_accessed = int(B * L * C * 2 + B * L * C * np.dtype(out_dtype).itemsize
                         + w_packed.size * 2 + bias_packed.size * 4)

    # Explicit VMEM budget (double-buffered in/out blocks + resident params + live
    # intermediates), capped at 48 MiB so it stays inside v7x's 64 MiB physical VMEM.
    co_max_p = max(cp for _, cp in chans_p)
    block_in_bytes = bt * L * C * 2
    block_out_bytes = bt * L * C * np.dtype(out_dtype).itemsize
    param_bytes = w_packed.size * 2 + bias_packed.size * 4
    live_bytes = 24 * bt * L * co_max_p * 4
    vmem_limit = int(min(48 << 20,
                         max(8 << 20,
                             4 * (block_in_bytes + block_out_bytes)
                             + param_bytes + live_bytes + (1 << 20))))

    return pl.pallas_call(
        _make_kernel(bt, L, chans, chans_p),
        out_shape=jax.ShapeDtypeStruct((B, L, C), out_dtype),
        grid=(nb,),
        in_specs=[
            pl.BlockSpec((bt, L, C), lambda i: (i, 0, 0)),
            pl.BlockSpec(w_packed.shape, lambda i: (0, 0)),      # grid-invariant params
            pl.BlockSpec(bias_packed.shape, lambda i: (0, 0)),
        ],
        out_specs=pl.BlockSpec((bt, L, C), lambda i: (i, 0, 0)),
        compiler_params=pltpu.CompilerParams(
            dimension_semantics=("parallel",),
            vmem_limit_bytes=vmem_limit),
        cost_estimate=pl.CostEstimate(flops=flops, transcendentals=0,
                                      bytes_accessed=bytes_accessed),
    )(x, w_packed, bias_packed)


# -------------------- deterministic params + BN folding ----------------------

def _fold_conv_bn(W, b, gamma, beta, mean, var, eps=1e-5):
    # Conv (PyTorch layout (C_out, C_in, K)) followed by inference BatchNorm1d.
    scale = gamma / jnp.sqrt(var + eps)
    return W * scale[:, None, None], (b - mean) * scale + beta


def make_block_params(key, cin, cout):
    """Deterministic Conv1dBlock params, BN-folded and fused.

    Returns (Wa, Ws, Wb, ba, bbd), all f32, unpadded:
      Wa (cout, K*cin) : conv_a taps, col k*cin+i = W[o, i, k]
      Ws (cout, K*cin) : 1x1 skip conv placed in the centre-tap columns
      Wb (cout, K*cout): conv_b taps
      ba (cout,)       : conv_a(+BN) bias (added before relu)
      bbd (cout,)      : conv_b bias + skip-BN bias (added before final relu)
    """
    ks = jax.random.split(key, 17)

    def bn(i):
        gamma = 1.0 + 0.1 * jax.random.normal(ks[i], (cout,), jnp.float32)
        beta = 0.1 * jax.random.normal(ks[i + 1], (cout,), jnp.float32)
        mean = 0.1 * jax.random.normal(ks[i + 2], (cout,), jnp.float32)
        var = 1.0 + 0.1 * jnp.abs(jax.random.normal(ks[i + 3], (cout,), jnp.float32))
        return gamma, beta, mean, var

    W1 = 0.3 * jax.random.normal(ks[0], (cout, cin, K), jnp.float32)
    b1 = 0.1 * jax.random.normal(ks[1], (cout,), jnp.float32)
    W2 = 0.3 * jax.random.normal(ks[2], (cout, cout, K), jnp.float32)
    b2 = 0.1 * jax.random.normal(ks[3], (cout,), jnp.float32)
    Wd = 0.5 * jax.random.normal(ks[4], (cout, cin, 1), jnp.float32)   # 1x1 conv, bias=False

    W1f, b1f = _fold_conv_bn(W1, b1, *bn(5))
    W2f, b2f = _fold_conv_bn(W2, b2, *bn(9))
    Wdf, bdf = _fold_conv_bn(Wd, jnp.zeros((cout,), jnp.float32), *bn(13))

    Wa = jnp.transpose(W1f, (0, 2, 1)).reshape(cout, K * cin)     # col k*cin+i = W[o,i,k]
    Ws = jnp.zeros((cout, K * cin), jnp.float32)
    Ws = Ws.at[:, PAD * cin:(PAD + 1) * cin].set(Wdf[:, :, 0])    # skip = centre tap only
    Wb = jnp.transpose(W2f, (0, 2, 1)).reshape(cout, K * cout)
    return Wa, Ws, Wb, b1f, b2f + bdf


def _pad_taps(W, ci, ci_p, co, co_p, wcols):
    # (co, K*ci) col k*ci+i  ->  (co_p, wcols) col k*ci_p+i, zero padded.
    W3 = W.reshape(co, K, ci)
    W3 = jnp.pad(W3, ((0, co_p - co), (0, 0), (0, ci_p - ci)))
    Wp = W3.reshape(co_p, K * ci_p)
    return jnp.pad(Wp, ((0, 0), (0, wcols - K * ci_p)))


def pack_params(blocks, chans):
    """Pack all blocks into one bf16 weight slab + one f32 bias slab.

    Every channel group is padded to a multiple of 8 so the row offsets, the
    tap-stack groups and the conv_a/skip result split are 8-sublane aligned
    (padded rows/cols are zero -> no effect on the math)."""
    chans_p = [(_pad8(ci), _pad8(co)) for ci, co in chans]
    wcols = K * max(max(cp) for cp in chans_p)
    wrows, brows = [], []
    for (Wa, Ws, Wb, ba, bbd), (ci, co), (ci_p, co_p) in zip(blocks, chans, chans_p):
        wrows.append(_pad_taps(Wa, ci, ci_p, co, co_p, wcols))
        wrows.append(_pad_taps(Ws, ci, ci_p, co, co_p, wcols))
        wrows.append(_pad_taps(Wb, co, co_p, co, co_p, wcols))
        brows.append(jnp.pad(jnp.stack([ba, bbd], axis=1), ((0, co_p - co), (0, 0))))
    w_packed = jnp.concatenate(wrows, axis=0).astype(jnp.bfloat16)
    b_packed = jnp.concatenate(brows, axis=0).astype(jnp.float32)
    return w_packed, b_packed


# ---------------------------- pure-JAX reference ------------------------------

def _ref_stack_taps(h):
    L = h.shape[-1]
    l0 = h[..., 0:1]
    r0 = h[..., L - 1:L]
    hp = jnp.concatenate([l0, l0, h, r0, r0], axis=-1)
    return jnp.concatenate([hp[..., k:k + L] for k in range(K)], axis=1)


def _ref_pool(h):
    L = h.shape[-1]
    z = jnp.zeros_like(h[..., 0:1])
    hp = jnp.concatenate([z, h, z], axis=-1)
    return (hp[..., 0:L] + hp[..., 1:L + 1] + hp[..., 2:L + 2]) * (1.0 / 3.0)


def ref_forward(x, blocks):
    """LightCNN1DModel.forward in eval mode (BN folded), same bf16 matmul operands."""
    h = jnp.transpose(x, (0, 2, 1))                              # (B, C, L)
    for i, (Wa, Ws, Wb, ba, bbd) in enumerate(blocks):
        co = ba.shape[0]
        Wab = jnp.concatenate([Wa, Ws], axis=0).astype(jnp.bfloat16)
        st = _ref_stack_taps(h).astype(jnp.bfloat16)
        z = jnp.einsum('oc,bcl->bol', Wab, st, preferred_element_type=jnp.float32)
        t = jnp.maximum(z[:, :co, :] + ba[None, :, None], 0.0)
        skip = z[:, co:, :]
        st2 = _ref_stack_taps(t).astype(jnp.bfloat16)
        u = jnp.einsum('oc,bcl->bol', Wb.astype(jnp.bfloat16), st2,
                       preferred_element_type=jnp.float32)
        h = jnp.maximum(u + skip + bbd[None, :, None], 0.0)
        if i < len(blocks) - 1:
            h = _ref_pool(h)
    return jnp.transpose(h, (0, 2, 1))


# ------------------------------------ main ------------------------------------

if __name__ == "__main__":
    B, L, C = 2, 16, 4   # batch=2, seq=16, in_channels=4
    key = jax.random.PRNGKey(0)
    kx, k1, k2, k3 = jax.random.split(key, 4)
    x = jax.random.normal(kx, (B, L, C), jnp.float32)

    chans = _block_channels(C)
    blocks = [make_block_params(k, ci, co) for k, (ci, co) in zip((k1, k2, k3), chans)]
    w_packed, bias_packed = pack_params(blocks, chans)

    out = light_cnn1d(x, w_packed, bias_packed, C)
    out = jax.block_until_ready(out)
    assert out.shape == (B, L, C)

    ref = ref_forward(x, blocks)
    # bf16 matmul operands (f32 accumulation) -> tolerance sized accordingly.
    np.testing.assert_allclose(np.asarray(out), np.asarray(ref), rtol=2e-2, atol=2e-2)
    print("KERNEL_OK")
</pallas_src>

<mosaic_0001>
module attributes {stable_mosaic.version = 11 : i64} {
  func.func @kernel(%arg0: i32, %arg1: memref<2x16x4xbf16, #tpu.memory_space<vmem>>, %arg2: memref<72x40xbf16, #tpu.memory_space<vmem>>, %arg3: memref<24x2xf32, #tpu.memory_space<vmem>>, %arg4: memref<2x16x4xf32, #tpu.memory_space<vmem>>) attributes {dimension_semantics = [#tpu.dimension_semantics<parallel>], iteration_bounds = array<i64: 1>, scalar_prefetch = 0 : i64, scratch_operands = 0 : i64, tpu.core_type = #tpu.core_type<tc>, window_params = [{transform_indices = @transform_0, window_bounds = array<i64: 2, 16, 4>}, {pipeline_mode = #tpu.pipeline_mode<synchronous>, transform_indices = @transform_1, window_bounds = array<i64: 72, 40>}, {pipeline_mode = #tpu.pipeline_mode<synchronous>, transform_indices = @transform_2, window_bounds = array<i64: 24, 2>}, {transform_indices = @transform_3, window_bounds = array<i64: 2, 16, 4>}]} {
    %0 = tpu.iota {dimensions = array<i32: 1>} : vector<1x32xi32>
    %c15_i32 = arith.constant 15 : i32
    %1 = vector.broadcast %c15_i32 : i32 to vector<1x32xi32>
    %2 = arith.andi %0, %1 : vector<1x32xi32>
    %c0_i32 = arith.constant 0 : i32
    %3 = vector.broadcast %c0_i32 : i32 to vector<1x32xi32>
    %4 = arith.cmpi eq, %2, %3 : vector<1x32xi32>
    %c1_i32 = arith.constant 1 : i32
    %5 = vector.broadcast %c1_i32 : i32 to vector<1x32xi32>
    %6 = arith.cmpi eq, %2, %5 : vector<1x32xi32>
    %c14_i32 = arith.constant 14 : i32
    %7 = vector.broadcast %c14_i32 : i32 to vector<1x32xi32>
    %8 = arith.cmpi eq, %2, %7 : vector<1x32xi32>
    %c15_i32_0 = arith.constant 15 : i32
    %9 = vector.broadcast %c15_i32_0 : i32 to vector<1x32xi32>
    %10 = arith.cmpi eq, %2, %9 : vector<1x32xi32>
    %c0 = arith.constant 0 : index
    %c0_1 = arith.constant 0 : index
    %c0_2 = arith.constant 0 : index
    %11 = vector.load %arg1[%c0, %c0_1, %c0_2] : memref<2x16x4xbf16, #tpu.memory_space<vmem>>, vector<2x16x4xbf16>
    %12 = arith.extf %11 : vector<2x16x4xbf16> to vector<2x16x4xf32>
    %13 = vector.shape_cast %12 : vector<2x16x4xf32> to vector<32x4xf32>
    %cst = arith.constant 0.000000e+00 : f32
    %14 = vector.broadcast %cst : f32 to vector<32x4xf32>
    %15 = tpu.concatenate %13, %14 in 1 : vector<32x4xf32>, vector<32x4xf32> -> vector<32x8xf32>
    %16 = tpu.transpose %15, [1, 0] : vector<32x8xf32> -> vector<8x32xf32>
    %c0_3 = arith.constant 0 : index
    %c0_4 = arith.constant 0 : index
    %17 = vector.load %arg2[%c0_3, %c0_4] : memref<72x40xbf16, #tpu.memory_space<vmem>>, vector<16x40xbf16>
    %c16 = arith.constant 16 : index
    %c0_5 = arith.constant 0 : index
    %18 = vector.load %arg2[%c16, %c0_5] : memref<72x40xbf16, #tpu.memory_space<vmem>>, vector<8x40xbf16>
    %c0_6 = arith.constant 0 : index
    %c0_7 = arith.constant 0 : index
    %19 = vector.load %arg3[%c0_6, %c0_7] : memref<24x2xf32, #tpu.memory_space<vmem>>, vector<8x1xf32>
    %c0_8 = arith.constant 0 : index
    %c1 = arith.constant 1 : index
    %20 = vector.load %arg3[%c0_8, %c1] : memref<24x2xf32, #tpu.memory_space<vmem>>, vector<8x1xf32>
    %21 = vector.extract_strided_slice %16 {offsets = [0, 31], sizes = [8, 1], strides = [1, 1]} : vector<8x32xf32> to vector<8x1xf32>
    %22 = vector.extract_strided_slice %16 {offsets = [0, 0], sizes = [8, 31], strides = [1, 1]} : vector<8x32xf32> to vector<8x31xf32>
    %23 = tpu.concatenate %21, %22 in 1 : vector<8x1xf32>, vector<8x31xf32> -> vector<8x32xf32>
    %24 = vector.extract_strided_slice %16 {offsets = [0, 30], sizes = [8, 2], strides = [1, 1]} : vector<8x32xf32> to vector<8x2xf32>
    %25 = vector.extract_strided_slice %16 {offsets = [0, 0], sizes = [8, 30], strides = [1, 1]} : vector<8x32xf32> to vector<8x30xf32>
    %26 = tpu.concatenate %24, %25 in 1 : vector<8x2xf32>, vector<8x30xf32> -> vector<8x32xf32>
    %27 = vector.extract_strided_slice %16 {offsets = [0, 1], sizes = [8, 31], strides = [1, 1]} : vector<8x32xf32> to vector<8x31xf32>
    %28 = vector.extract_strided_slice %16 {offsets = [0, 0], sizes = [8, 1], strides = [1, 1]} : vector<8x32xf32> to vector<8x1xf32>
    %29 = tpu.concatenate %27, %28 in 1 : vector<8x31xf32>, vector<8x1xf32> -> vector<8x32xf32>
    %30 = vector.extract_strided_slice %16 {offsets = [0, 2], sizes = [8, 30], strides = [1, 1]} : vector<8x32xf32> to vector<8x30xf32>
    %31 = vector.extract_strided_slice %16 {offsets = [0, 0], sizes = [8, 2], strides = [1, 1]} : vector<8x32xf32> to vector<8x2xf32>
    %32 = tpu.concatenate %30, %31 in 1 : vector<8x30xf32>, vector<8x2xf32> -> vector<8x32xf32>
    %33 = vector.shape_cast %6 : vector<1x32xi1> to vector<1x32xi1>
    %34 = vector.broadcast %33 : vector<1x32xi1> to vector<8x32xi1>
    %35 = arith.select %34, %23, %26 : vector<8x32xi1>, vector<8x32xf32>
    %36 = vector.shape_cast %4 : vector<1x32xi1> to vector<1x32xi1>
    %37 = vector.broadcast %36 : vector<1x32xi1> to vector<8x32xi1>
    %38 = arith.select %37, %16, %35 : vector<8x32xi1>, vector<8x32xf32>
    %39 = vector.shape_cast %4 : vector<1x32xi1> to vector<1x32xi1>
    %40 = vector.broadcast %39 : vector<1x32xi1> to vector<8x32xi1>
    %41 = arith.select %40, %16, %23 : vector<8x32xi1>, vector<8x32xf32>
    %42 = vector.shape_cast %10 : vector<1x32xi1> to vector<1x32xi1>
    %43 = vector.broadcast %42 : vector<1x32xi1> to vector<8x32xi1>
    %44 = arith.select %43, %16, %29 : vector<8x32xi1>, vector<8x32xf32>
    %45 = vector.shape_cast %8 : vector<1x32xi1> to vector<1x32xi1>
    %46 = vector.broadcast %45 : vector<1x32xi1> to vector<8x32xi1>
    %47 = arith.select %46, %29, %32 : vector<8x32xi1>, vector<8x32xf32>
    %48 = vector.shape_cast %10 : vector<1x32xi1> to vector<1x32xi1>
    %49 = vector.broadcast %48 : vector<1x32xi1> to vector<8x32xi1>
    %50 = arith.select %49, %16, %47 : vector<8x32xi1>, vector<8x32xf32>
    %51 = tpu.concatenate %38, %41, %16, %44, %50 in 0 : vector<8x32xf32>, vector<8x32xf32>, vector<8x32xf32>, vector<8x32xf32>, vector<8x32xf32> -> vector<40x32xf32>
    %52 = arith.truncf %51 : vector<40x32xf32> to vector<40x32xbf16>
    %cst_9 = arith.constant dense<0.000000e+00> : vector<16x32xf32>
    %53 = tpu.matmul %17, %52, %cst_9 {dimension_numbers = #tpu.dot_dimension_numbers<[1], [0], [0], [1], [0, 0, 1, 1], [], []>} : vector<16x40xbf16>, vector<40x32xbf16>, vector<16x32xf32> -> vector<16x32xf32>
    %54 = vector.extract_strided_slice %53 {offsets = [0, 0], sizes = [8, 32], strides = [1, 1]} : vector<16x32xf32> to vector<8x32xf32>
    %55 = vector.broadcast %19 : vector<8x1xf32> to vector<8x32xf32>
    %56 = arith.addf %54, %55 : vector<8x32xf32>
    %cst_10 = arith.constant 0.000000e+00 : f32
    %57 = vector.broadcast %cst_10 : f32 to vector<8x32xf32>
    %58 = arith.maximumf %56, %57 : vector<8x32xf32>
    %59 = vector.extract_strided_slice %53 {offsets = [8, 0], sizes = [8, 32], strides = [1, 1]} : vector<16x32xf32> to vector<8x32xf32>
    %60 = vector.extract_strided_slice %58 {offsets = [0, 31], sizes = [8, 1], strides = [1, 1]} : vector<8x32xf32> to vector<8x1xf32>
    %61 = vector.extract_strided_slice %58 {offsets = [0, 0], sizes = [8, 31], strides = [1, 1]} : vector<8x32xf32> to vector<8x31xf32>
    %62 = tpu.concatenate %60, %61 in 1 : vector<8x1xf32>, vector<8x31xf32> -> vector<8x32xf32>
    %63 = vector.extract_strided_slice %58 {offsets = [0, 30], sizes = [8, 2], strides = [1, 1]} : vector<8x32xf32> to vector<8x2xf32>
    %64 = vector.extract_strided_slice %58 {offsets = [0, 0], sizes = [8, 30], strides = [1, 1]} : vector<8x32xf32> to vector<8x30xf32>
    %65 = tpu.concatenate %63, %64 in 1 : vector<8x2xf32>, vector<8x30xf32> -> vector<8x32xf32>
    %66 = vector.extract_strided_slice %58 {offsets = [0, 1], sizes = [8, 31], strides = [1, 1]} : vector<8x32xf32> to vector<8x31xf32>
    %67 = vector.extract_strided_slice %58 {offsets = [0, 0], sizes = [8, 1], strides = [1, 1]} : vector<8x32xf32> to vector<8x1xf32>
    %68 = tpu.concatenate %66, %67 in 1 : vector<8x31xf32>, vector<8x1xf32> -> vector<8x32xf32>
    %69 = vector.extract_strided_slice %58 {offsets = [0, 2], sizes = [8, 30], strides = [1, 1]} : vector<8x32xf32> to vector<8x30xf32>
    %70 = vector.extract_strided_slice %58 {offsets = [0, 0], sizes = [8, 2], strides = [1, 1]} : vector<8x32xf32> to vector<8x2xf32>
    %71 = tpu.concatenate %69, %70 in 1 : vector<8x30xf32>, vector<8x2xf32> -> vector<8x32xf32>
    %72 = vector.shape_cast %6 : vector<1x32xi1> to vector<1x32xi1>
    %73 = vector.broadcast %72 : vector<1x32xi1> to vector<8x32xi1>
    %74 = arith.select %73, %62, %65 : vector<8x32xi1>, vector<8x32xf32>
    %75 = vector.shape_cast %4 : vector<1x32xi1> to vector<1x32xi1>
    %76 = vector.broadcast %75 : vector<1x32xi1> to vector<8x32xi1>
    %77 = arith.select %76, %58, %74 : vector<8x32xi1>, vector<8x32xf32>
    %78 = vector.shape_cast %4 : vector<1x32xi1> to vector<1x32xi1>
    %79 = vector.broadcast %78 : vector<1x32xi1> to vector<8x32xi1>
    %80 = arith.select %79, %58, %62 : vector<8x32xi1>, vector<8x32xf32>
    %81 = vector.shape_cast %10 : vector<1x32xi1> to vector<1x32xi1>
    %82 = vector.broadcast %81 : vector<1x32xi1> to vector<8x32xi1>
    %83 = arith.select %82, %58, %68 : vector<8x32xi1>, vector<8x32xf32>
    %84 = vector.shape_cast %8 : vector<1x32xi1> to vector<1x32xi1>
    %85 = vector.broadcast %84 : vector<1x32xi1> to vector<8x32xi1>
    %86 = arith.select %85, %68, %71 : vector<8x32xi1>, vector<8x32xf32>
    %87 = vector.shape_cast %10 : vector<1x32xi1> to vector<1x32xi1>
    %88 = vector.broadcast %87 : vector<1x32xi1> to vector<8x32xi1>
    %89 = arith.select %88, %58, %86 : vector<8x32xi1>, vector<8x32xf32>
    %90 = tpu.concatenate %77, %80, %58, %83, %89 in 0 : vector<8x32xf32>, vector<8x32xf32>, vector<8x32xf32>, vector<8x32xf32>, vector<8x32xf32> -> vector<40x32xf32>
    %91 = arith.truncf %90 : vector<40x32xf32> to vector<40x32xbf16>
    %cst_11 = arith.constant dense<0.000000e+00> : vector<8x32xf32>
    %92 = tpu.matmul %18, %91, %cst_11 {dimension_numbers = #tpu.dot_dimension_numbers<[1], [0], [0], [1], [0, 0, 1, 1], [], []>} : vector<8x40xbf16>, vector<40x32xbf16>, vector<8x32xf32> -> vector<8x32xf32>
    %93 = arith.addf %92, %59 : vector<8x32xf32>
    %94 = vector.broadcast %20 : vector<8x1xf32> to vector<8x32xf32>
    %95 = arith.addf %93, %94 : vector<8x32xf32>
    %cst_12 = arith.constant 0.000000e+00 : f32
    %96 = vector.broadcast %cst_12 : f32 to vector<8x32xf32>
    %97 = arith.maximumf %95, %96 : vector<8x32xf32>
    %98 = vector.extract_strided_slice %97 {offsets = [0, 31], sizes = [8, 1], strides = [1, 1]} : vector<8x32xf32> to vector<8x1xf32>
    %99 = vector.extract_strided_slice %97 {offsets = [0, 0], sizes = [8, 31], strides = [1, 1]} : vector<8x32xf32> to vector<8x31xf32>
    %100 = tpu.concatenate %98, %99 in 1 : vector<8x1xf32>, vector<8x31xf32> -> vector<8x32xf32>
    %cst_13 = arith.constant 0.000000e+00 : f32
    %101 = vector.shape_cast %4 : vector<1x32xi1> to vector<1x32xi1>
    %102 = vector.broadcast %101 : vector<1x32xi1> to vector<8x32xi1>
    %103 = vector.broadcast %cst_13 : f32 to vector<8x32xf32>
    %104 = arith.select %102, %103, %100 : vector<8x32xi1>, vector<8x32xf32>
    %105 = vector.extract_strided_slice %97 {offsets = [0, 1], sizes = [8, 31], strides = [1, 1]} : vector<8x32xf32> to vector<8x31xf32>
    %106 = vector.extract_strided_slice %97 {offsets = [0, 0], sizes = [8, 1], strides = [1, 1]} : vector<8x32xf32> to vector<8x1xf32>
    %107 = tpu.concatenate %105, %106 in 1 : vector<8x31xf32>, vector<8x1xf32> -> vector<8x32xf32>
    %cst_14 = arith.constant 0.000000e+00 : f32
    %108 = vector.shape_cast %10 : vector<1x32xi1> to vector<1x32xi1>
    %109 = vector.broadcast %108 : vector<1x32xi1> to vector<8x32xi1>
    %110 = vector.broadcast %cst_14 : f32 to vector<8x32xf32>
    %111 = arith.select %109, %110, %107 : vector<8x32xi1>, vector<8x32xf32>
    %112 = arith.addf %104, %97 : vector<8x32xf32>
    %113 = arith.addf %112, %111 : vector<8x32xf32>
    %cst_15 = arith.constant 0.333333343 : f32
    %114 = vector.broadcast %cst_15 : f32 to vector<8x32xf32>
    %115 = arith.mulf %113, %114 : vector<8x32xf32>
    %c24 = arith.constant 24 : index
    %c0_16 = arith.constant 0 : index
    %116 = vector.load %arg2[%c24, %c0_16] : memref<72x40xbf16, #tpu.memory_space<vmem>>, vector<16x40xbf16>
    %c40 = arith.constant 40 : index
    %c0_17 = arith.constant 0 : index
    %117 = vector.load %arg2[%c40, %c0_17] : memref<72x40xbf16, #tpu.memory_space<vmem>>, vector<8x40xbf16>
    %c8 = arith.constant 8 : index
    %c0_18 = arith.constant 0 : index
    %118 = vector.load %arg3[%c8, %c0_18] : memref<24x2xf32, #tpu.memory_space<vmem>>, vector<8x1xf32>
    %c8_19 = arith.constant 8 : index
    %c1_20 = arith.constant 1 : index
    %119 = vector.load %arg3[%c8_19, %c1_20] : memref<24x2xf32, #tpu.memory_space<vmem>>, vector<8x1xf32>
    %120 = vector.extract_strided_slice %115 {offsets = [0, 31], sizes = [8, 1], strides = [1, 1]} : vector<8x32xf32> to vector<8x1xf32>
    %121 = vector.extract_strided_slice %115 {offsets = [0, 0], sizes = [8, 31], strides = [1, 1]} : vector<8x32xf32> to vector<8x31xf32>
    %122 = tpu.concatenate %120, %121 in 1 : vector<8x1xf32>, vector<8x31xf32> -> vector<8x32xf32>
    %123 = vector.extract_strided_slice %115 {offsets = [0, 30], sizes = [8, 2], strides = [1, 1]} : vector<8x32xf32> to vector<8x2xf32>
    %124 = vector.extract_strided_slice %115 {offsets = [0, 0], sizes = [8, 30], strides = [1, 1]} : vector<8x32xf32> to vector<8x30xf32>
    %125 = tpu.concatenate %123, %124 in 1 : vector<8x2xf32>, vector<8x30xf32> -> vector<8x32xf32>
    %126 = vector.extract_strided_slice %115 {offsets = [0, 1], sizes = [8, 31], strides = [1, 1]} : vector<8x32xf32> to vector<8x31xf32>
    %127 = vector.extract_strided_slice %115 {offsets = [0, 0], sizes = [8, 1], strides = [1, 1]} : vector<8x32xf32> to vector<8x1xf32>
    %128 = tpu.concatenate %126, %127 in 1 : vector<8x31xf32>, vector<8x1xf32> -> vector<8x32xf32>
    %129 = vector.extract_strided_slice %115 {offsets = [0, 2], sizes = [8, 30], strides = [1, 1]} : vector<8x32xf32> to vector<8x30xf32>
    %130 = vector.extract_strided_slice %115 {offsets = [0, 0], sizes = [8, 2], strides = [1, 1]} : vector<8x32xf32> to vector<8x2xf32>
    %131 = tpu.concatenate %129, %130 in 1 : vector<8x30xf32>, vector<8x2xf32> -> vector<8x32xf32>
    %132 = vector.shape_cast %6 : vector<1x32xi1> to vector<1x32xi1>
    %133 = vector.broadcast %132 : vector<1x32xi1> to vector<8x32xi1>
    %134 = arith.select %133, %122, %125 : vector<8x32xi1>, vector<8x32xf32>
    %135 = vector.shape_cast %4 : vector<1x32xi1> to vector<1x32xi1>
    %136 = vector.broadcast %135 : vector<1x32xi1> to vector<8x32xi1>
    %137 = arith.select %136, %115, %134 : vector<8x32xi1>, vector<8x32xf32>
    %138 = vector.shape_cast %4 : vector<1x32xi1> to vector<1x32xi1>
    %139 = vector.broadcast %138 : vector<1x32xi1> to vector<8x32xi1>
    %140 = arith.select %139, %115, %122 : vector<8x32xi1>, vector<8x32xf32>
    %141 = vector.shape_cast %10 : vector<1x32xi1> to vector<1x32xi1>
    %142 = vector.broadcast %141 : vector<1x32xi1> to vector<8x32xi1>
    %143 = arith.select %142, %115, %128 : vector<8x32xi1>, vector<8x32xf32>
    %144 = vector.shape_cast %8 : vector<1x32xi1> to vector<1x32xi1>
    %145 = vector.broadcast %144 : vector<1x32xi1> to vector<8x32xi1>
    %146 = arith.select %145, %128, %131 : vector<8x32xi1>, vector<8x32xf32>
    %147 = vector.shape_cast %10 : vector<1x32xi1> to vector<1x32xi1>
    %148 = vector.broadcast %147 : vector<1x32xi1> to vector<8x32xi1>
    %149 = arith.select %148, %115, %146 : vector<8x32xi1>, vector<8x32xf32>
    %150 = tpu.concatenate %137, %140, %115, %143, %149 in 0 : vector<8x32xf32>, vector<8x32xf32>, vector<8x32xf32>, vector<8x32xf32>, vector<8x32xf32> -> vector<40x32xf32>
    %151 = arith.truncf %150 : vector<40x32xf32> to vector<40x32xbf16>
    %cst_21 = arith.constant dense<0.000000e+00> : vector<16x32xf32>
    %152 = tpu.matmul %116, %151, %cst_21 {dimension_numbers = #tpu.dot_dimension_numbers<[1], [0], [0], [1], [0, 0, 1, 1], [], []>} : vector<16x40xbf16>, vector<40x32xbf16>, vector<16x32xf32> -> vector<16x32xf32>
    %153 = vector.extract_strided_slice %152 {offsets = [0, 0], sizes = [8, 32], strides = [1, 1]} : vector<16x32xf32> to vector<8x32xf32>
    %154 = vector.broadcast %118 : vector<8x1xf32> to vector<8x32xf32>
    %155 = arith.addf %153, %154 : vector<8x32xf32>
    %cst_22 = arith.constant 0.000000e+00 : f32
    %156 = vector.broadcast %cst_22 : f32 to vector<8x32xf32>
    %157 = arith.maximumf %155, %156 : vector<8x32xf32>
    %158 = vector.extract_strided_slice %152 {offsets = [8, 0], sizes = [8, 32], strides = [1, 1]} : vector<16x32xf32> to vector<8x32xf32>
    %159 = vector.extract_strided_slice %157 {offsets = [0, 31], sizes = [8, 1], strides = [1, 1]} : vector<8x32xf32> to vector<8x1xf32>
    %160 = vector.extract_strided_slice %157 {offsets = [0, 0], sizes = [8, 31], strides = [1, 1]} : vector<8x32xf32> to vector<8x31xf32>
    %161 = tpu.concatenate %159, %160 in 1 : vector<8x1xf32>, vector<8x31xf32> -> vector<8x32xf32>
    %162 = vector.extract_strided_slice %157 {offsets = [0, 30], sizes = [8, 2], strides = [1, 1]} : vector<8x32xf32> to vector<8x2xf32>
    %163 = vector.extract_strided_slice %157 {offsets = [0, 0], sizes = [8, 30], strides = [1, 1]} : vector<8x32xf32> to vector<8x30xf32>
    %164 = tpu.concatenate %162, %163 in 1 : vector<8x2xf32>, vector<8x30xf32> -> vector<8x32xf32>
    %165 = vector.extract_strided_slice %157 {offsets = [0, 1], sizes = [8, 31], strides = [1, 1]} : vector<8x32xf32> to vector<8x31xf32>
    %166 = vector.extract_strided_slice %157 {offsets = [0, 0], sizes = [8, 1], strides = [1, 1]} : vector<8x32xf32> to vector<8x1xf32>
    %167 = tpu.concatenate %165, %166 in 1 : vector<8x31xf32>, vector<8x1xf32> -> vector<8x32xf32>
    %168 = vector.extract_strided_slice %157 {offsets = [0, 2], sizes = [8, 30], strides = [1, 1]} : vector<8x32xf32> to vector<8x30xf32>
    %169 = vector.extract_strided_slice %157 {offsets = [0, 0], sizes = [8, 2], strides = [1, 1]} : vector<8x32xf32> to vector<8x2xf32>
    %170 = tpu.concatenate %168, %169 in 1 : vector<8x30xf32>, vector<8x2xf32> -> vector<8x32xf32>
    %171 = vector.shape_cast %6 : vector<1x32xi1> to vector<1x32xi1>
    %172 = vector.broadcast %171 : vector<1x32xi1> to vector<8x32xi1>
    %173 = arith.select %172, %161, %164 : vector<8x32xi1>, vector<8x32xf32>
    %174 = vector.shape_cast %4 : vector<1x32xi1> to vector<1x32xi1>
    %175 = vector.broadcast %174 : vector<1x32xi1> to vector<8x32xi1>
    %176 = arith.select %175, %157, %173 : vector<8x32xi1>, vector<8x32xf32>
    %177 = vector.shape_cast %4 : vector<1x32xi1> to vector<1x32xi1>
    %178 = vector.broadcast %177 : vector<1x32xi1> to vector<8x32xi1>
    %179 = arith.select %178, %157, %161 : vector<8x32xi1>, vector<8x32xf32>
    %180 = vector.shape_cast %10 : vector<1x32xi1> to vector<1x32xi1>
    %181 = vector.broadcast %180 : vector<1x32xi1> to vector<8x32xi1>
    %182 = arith.select %181, %157, %167 : vector<8x32xi1>, vector<8x32xf32>
    %183 = vector.shape_cast %8 : vector<1x32xi1> to vector<1x32xi1>
    %184 = vector.broadcast %183 : vector<1x32xi1> to vector<8x32xi1>
    %185 = arith.select %184, %167, %170 : vector<8x32xi1>, vector<8x32xf32>
    %186 = vector.shape_cast %10 : vector<1x32xi1> to vector<1x32xi1>
    %187 = vector.broadcast %186 : vector<1x32xi1> to vector<8x32xi1>
    %188 = arith.select %187, %157, %185 : vector<8x32xi1>, vector<8x32xf32>
    %189 = tpu.concatenate %176, %179, %157, %182, %188 in 0 : vector<8x32xf32>, vector<8x32xf32>, vector<8x32xf32>, vector<8x32xf32>, vector<8x32xf32> -> vector<40x32xf32>
    %190 = arith.truncf %189 : vector<40x32xf32> to vector<40x32xbf16>
    %cst_23 = arith.constant dense<0.000000e+00> : vector<8x32xf32>
    %191 = tpu.matmul %117, %190, %cst_23 {dimension_numbers = #tpu.dot_dimension_numbers<[1], [0], [0], [1], [0, 0, 1, 1], [], []>} : vector<8x40xbf16>, vector<40x32xbf16>, vector<8x32xf32> -> vector<8x32xf32>
    %192 = arith.addf %191, %158 : vector<8x32xf32>
    %193 = vector.broadcast %119 : vector<8x1xf32> to vector<8x32xf32>
    %194 = arith.addf %192, %193 : vector<8x32xf32>
    %cst_24 = arith.constant 0.000000e+00 : f32
    %195 = vector.broadcast %cst_24 : f32 to vector<8x32xf32>
    %196 = arith.maximumf %194, %195 : vector<8x32xf32>
    %197 = vector.extract_strided_slice %196 {offsets = [0, 31], sizes = [8, 1], strides = [1, 1]} : vector<8x32xf32> to vector<8x1xf32>
    %198 = vector.extract_strided_slice %196 {offsets = [0, 0], sizes = [8, 31], strides = [1, 1]} : vector<8x32xf32> to vector<8x31xf32>
    %199 = tpu.concatenate %197, %198 in 1 : vector<8x1xf32>, vector<8x31xf32> -> vector<8x32xf32>
    %cst_25 = arith.constant 0.000000e+00 : f32
    %200 = vector.shape_cast %4 : vector<1x32xi1> to vector<1x32xi1>
    %201 = vector.broadcast %200 : vector<1x32xi1> to vector<8x32xi1>
    %202 = vector.broadcast %cst_25 : f32 to vector<8x32xf32>
    %203 = arith.select %201, %202, %199 : vector<8x32xi1>, vector<8x32xf32>
    %204 = vector.extract_strided_slice %196 {offsets = [0, 1], sizes = [8, 31], strides = [1, 1]} : vector<8x32xf32> to vector<8x31xf32>
    %205 = vector.extract_strided_slice %196 {offsets = [0, 0], sizes = [8, 1], strides = [1, 1]} : vector<8x32xf32> to vector<8x1xf32>
    %206 = tpu.concatenate %204, %205 in 1 : vector<8x31xf32>, vector<8x1xf32> -> vector<8x32xf32>
    %cst_26 = arith.constant 0.000000e+00 : f32
    %207 = vector.shape_cast %10 : vector<1x32xi1> to vector<1x32xi1>
    %208 = vector.broadcast %207 : vector<1x32xi1> to vector<8x32xi1>
    %209 = vector.broadcast %cst_26 : f32 to vector<8x32xf32>
    %210 = arith.select %208, %209, %206 : vector<8x32xi1>, vector<8x32xf32>
    %211 = arith.addf %203, %196 : vector<8x32xf32>
    %212 = arith.addf %211, %210 : vector<8x32xf32>
    %cst_27 = arith.constant 0.333333343 : f32
    %213 = vector.broadcast %cst_27 : f32 to vector<8x32xf32>
    %214 = arith.mulf %212, %213 : vector<8x32xf32>
    %c48 = arith.constant 48 : index
    %c0_28 = arith.constant 0 : index
    %215 = vector.load %arg2[%c48, %c0_28] : memref<72x40xbf16, #tpu.memory_space<vmem>>, vector<16x40xbf16>
    %c64 = arith.constant 64 : index
    %c0_29 = arith.constant 0 : index
    %216 = vector.load %arg2[%c64, %c0_29] : memref<72x40xbf16, #tpu.memory_space<vmem>>, vector<8x40xbf16>
    %c16_30 = arith.constant 16 : index
    %c0_31 = arith.constant 0 : index
    %217 = vector.load %arg3[%c16_30, %c0_31] : memref<24x2xf32, #tpu.memory_space<vmem>>, vector<8x1xf32>
    %c16_32 = arith.constant 16 : index
    %c1_33 = arith.constant 1 : index
    %218 = vector.load %arg3[%c16_32, %c1_33] : memref<24x2xf32, #tpu.memory_space<vmem>>, vector<8x1xf32>
    %219 = vector.extract_strided_slice %214 {offsets = [0, 31], sizes = [8, 1], strides = [1, 1]} : vector<8x32xf32> to vector<8x1xf32>
    %220 = vector.extract_strided_slice %214 {offsets = [0, 0], sizes = [8, 31], strides = [1, 1]} : vector<8x32xf32> to vector<8x31xf32>
    %221 = tpu.concatenate %219, %220 in 1 : vector<8x1xf32>, vector<8x31xf32> -> vector<8x32xf32>
    %222 = vector.extract_strided_slice %214 {offsets = [0, 30], sizes = [8, 2], strides = [1, 1]} : vector<8x32xf32> to vector<8x2xf32>
    %223 = vector.extract_strided_slice %214 {offsets = [0, 0], sizes = [8, 30], strides = [1, 1]} : vector<8x32xf32> to vector<8x30xf32>
    %224 = tpu.concatenate %222, %223 in 1 : vector<8x2xf32>, vector<8x30xf32> -> vector<8x32xf32>
    %225 = vector.extract_strided_slice %214 {offsets = [0, 1], sizes = [8, 31], strides = [1, 1]} : vector<8x32xf32> to vector<8x31xf32>
    %226 = vector.extract_strided_slice %214 {offsets = [0, 0], sizes = [8, 1], strides = [1, 1]} : vector<8x32xf32> to vector<8x1xf32>
    %227 = tpu.concatenate %225, %226 in 1 : vector<8x31xf32>, vector<8x1xf32> -> vector<8x32xf32>
    %228 = vector.extract_strided_slice %214 {offsets = [0, 2], sizes = [8, 30], strides = [1, 1]} : vector<8x32xf32> to vector<8x30xf32>
    %229 = vector.extract_strided_slice %214 {offsets = [0, 0], sizes = [8, 2], strides = [1, 1]} : vector<8x32xf32> to vector<8x2xf32>
    %230 = tpu.concatenate %228, %229 in 1 : vector<8x30xf32>, vector<8x2xf32> -> vector<8x32xf32>
    %231 = vector.shape_cast %6 : vector<1x32xi1> to vector<1x32xi1>
    %232 = vector.broadcast %231 : vector<1x32xi1> to vector<8x32xi1>
    %233 = arith.select %232, %221, %224 : vector<8x32xi1>, vector<8x32xf32>
    %234 = vector.shape_cast %4 : vector<1x32xi1> to vector<1x32xi1>
    %235 = vector.broadcast %234 : vector<1x32xi1> to vector<8x32xi1>
    %236 = arith.select %235, %214, %233 : vector<8x32xi1>, vector<8x32xf32>
    %237 = vector.shape_cast %4 : vector<1x32xi1> to vector<1x32xi1>
    %238 = vector.broadcast %237 : vector<1x32xi1> to vector<8x32xi1>
    %239 = arith.select %238, %214, %221 : vector<8x32xi1>, vector<8x32xf32>
    %240 = vector.shape_cast %10 : vector<1x32xi1> to vector<1x32xi1>
    %241 = vector.broadcast %240 : vector<1x32xi1> to vector<8x32xi1>
    %242 = arith.select %241, %214, %227 : vector<8x32xi1>, vector<8x32xf32>
    %243 = vector.shape_cast %8 : vector<1x32xi1> to vector<1x32xi1>
    %244 = vector.broadcast %243 : vector<1x32xi1> to vector<8x32xi1>
    %245 = arith.select %244, %227, %230 : vector<8x32xi1>, vector<8x32xf32>
    %246 = vector.shape_cast %10 : vector<1x32xi1> to vector<1x32xi1>
    %247 = vector.broadcast %246 : vector<1x32xi1> to vector<8x32xi1>
    %248 = arith.select %247, %214, %245 : vector<8x32xi1>, vector<8x32xf32>
    %249 = tpu.concatenate %236, %239, %214, %242, %248 in 0 : vector<8x32xf32>, vector<8x32xf32>, vector<8x32xf32>, vector<8x32xf32>, vector<8x32xf32> -> vector<40x32xf32>
    %250 = arith.truncf %249 : vector<40x32xf32> to vector<40x32xbf16>
    %cst_34 = arith.constant dense<0.000000e+00> : vector<16x32xf32>
    %251 = tpu.matmul %215, %250, %cst_34 {dimension_numbers = #tpu.dot_dimension_numbers<[1], [0], [0], [1], [0, 0, 1, 1], [], []>} : vector<16x40xbf16>, vector<40x32xbf16>, vector<16x32xf32> -> vector<16x32xf32>
    %252 = vector.extract_strided_slice %251 {offsets = [0, 0], sizes = [8, 32], strides = [1, 1]} : vector<16x32xf32> to vector<8x32xf32>
    %253 = vector.broadcast %217 : vector<8x1xf32> to vector<8x32xf32>
    %254 = arith.addf %252, %253 : vector<8x32xf32>
    %cst_35 = arith.constant 0.000000e+00 : f32
    %255 = vector.broadcast %cst_35 : f32 to vector<8x32xf32>
    %256 = arith.maximumf %254, %255 : vector<8x32xf32>
    %257 = vector.extract_strided_slice %251 {offsets = [8, 0], sizes = [8, 32], strides = [1, 1]} : vector<16x32xf32> to vector<8x32xf32>
    %258 = vector.extract_strided_slice %256 {offsets = [0, 31], sizes = [8, 1], strides = [1, 1]} : vector<8x32xf32> to vector<8x1xf32>
    %259 = vector.extract_strided_slice %256 {offsets = [0, 0], sizes = [8, 31], strides = [1, 1]} : vector<8x32xf32> to vector<8x31xf32>
    %260 = tpu.concatenate %258, %259 in 1 : vector<8x1xf32>, vector<8x31xf32> -> vector<8x32xf32>
    %261 = vector.extract_strided_slice %256 {offsets = [0, 30], sizes = [8, 2], strides = [1, 1]} : vector<8x32xf32> to vector<8x2xf32>
    %262 = vector.extract_strided_slice %256 {offsets = [0, 0], sizes = [8, 30], strides = [1, 1]} : vector<8x32xf32> to vector<8x30xf32>
    %263 = tpu.concatenate %261, %262 in 1 : vector<8x2xf32>, vector<8x30xf32> -> vector<8x32xf32>
    %264 = vector.extract_strided_slice %256 {offsets = [0, 1], sizes = [8, 31], strides = [1, 1]} : vector<8x32xf32> to vector<8x31xf32>
    %265 = vector.extract_strided_slice %256 {offsets = [0, 0], sizes = [8, 1], strides = [1, 1]} : vector<8x32xf32> to vector<8x1xf32>
    %266 = tpu.concatenate %264, %265 in 1 : vector<8x31xf32>, vector<8x1xf32> -> vector<8x32xf32>
    %267 = vector.extract_strided_slice %256 {offsets = [0, 2], sizes = [8, 30], strides = [1, 1]} : vector<8x32xf32> to vector<8x30xf32>
    %268 = vector.extract_strided_slice %256 {offsets = [0, 0], sizes = [8, 2], strides = [1, 1]} : vector<8x32xf32> to vector<8x2xf32>
    %269 = tpu.concatenate %267, %268 in 1 : vector<8x30xf32>, vector<8x2xf32> -> vector<8x32xf32>
    %270 = vector.shape_cast %6 : vector<1x32xi1> to vector<1x32xi1>
    %271 = vector.broadcast %270 : vector<1x32xi1> to vector<8x32xi1>
    %272 = arith.select %271, %260, %263 : vector<8x32xi1>, vector<8x32xf32>
    %273 = vector.shape_cast %4 : vector<1x32xi1> to vector<1x32xi1>
    %274 = vector.broadcast %273 : vector<1x32xi1> to vector<8x32xi1>
    %275 = arith.select %274, %256, %272 : vector<8x32xi1>, vector<8x32xf32>
    %276 = vector.shape_cast %4 : vector<1x32xi1> to vector<1x32xi1>
    %277 = vector.broadcast %276 : vector<1x32xi1> to vector<8x32xi1>
    %278 = arith.select %277, %256, %260 : vector<8x32xi1>, vector<8x32xf32>
    %279 = vector.shape_cast %10 : vector<1x32xi1> to vector<1x32xi1>
    %280 = vector.broadcast %279 : vector<1x32xi1> to vector<8x32xi1>
    %281 = arith.select %280, %256, %266 : vector<8x32xi1>, vector<8x32xf32>
    %282 = vector.shape_cast %8 : vector<1x32xi1> to vector<1x32xi1>
    %283 = vector.broadcast %282 : vector<1x32xi1> to vector<8x32xi1>
    %284 = arith.select %283, %266, %269 : vector<8x32xi1>, vector<8x32xf32>
    %285 = vector.shape_cast %10 : vector<1x32xi1> to vector<1x32xi1>
    %286 = vector.broadcast %285 : vector<1x32xi1> to vector<8x32xi1>
    %287 = arith.select %286, %256, %284 : vector<8x32xi1>, vector<8x32xf32>
    %288 = tpu.concatenate %275, %278, %256, %281, %287 in 0 : vector<8x32xf32>, vector<8x32xf32>, vector<8x32xf32>, vector<8x32xf32>, vector<8x32xf32> -> vector<40x32xf32>
    %289 = arith.truncf %288 : vector<40x32xf32> to vector<40x32xbf16>
    %cst_36 = arith.constant dense<0.000000e+00> : vector<8x32xf32>
    %290 = tpu.matmul %216, %289, %cst_36 {dimension_numbers = #tpu.dot_dimension_numbers<[1], [0], [0], [1], [0, 0, 1, 1], [], []>} : vector<8x40xbf16>, vector<40x32xbf16>, vector<8x32xf32> -> vector<8x32xf32>
    %291 = arith.addf %290, %257 : vector<8x32xf32>
    %292 = vector.broadcast %218 : vector<8x1xf32> to vector<8x32xf32>
    %293 = arith.addf %291, %292 : vector<8x32xf32>
    %cst_37 = arith.constant 0.000000e+00 : f32
    %294 = vector.broadcast %cst_37 : f32 to vector<8x32xf32>
    %295 = arith.maximumf %293, %294 : vector<8x32xf32>
    %296 = tpu.transpose %295, [1, 0] : vector<8x32xf32> -> vector<32x8xf32>
    %297 = vector.extract_strided_slice %296 {offsets = [0, 0], sizes = [32, 4], strides = [1, 1]} : vector<32x8xf32> to vector<32x4xf32>
    %298 = vector.shape_cast %297 : vector<32x4xf32> to vector<2x16x4xf32>
    %c0_38 = arith.constant 0 : index
    %c0_39 = arith.constant 0 : index
    %c0_40 = arith.constant 0 : index
    %299 = vector.load %arg4[%c0_38, %c0_39, %c0_40] : memref<2x16x4xf32, #tpu.memory_space<vmem>>, vector<2x16x4xf32>
    tpu.vector_store %arg4[%c0_38, %c0_39, %c0_40], %298 {strides = array<i32>} : memref<2x16x4xf32, #tpu.memory_space<vmem>>, vector<2x16x4xf32>,
    return
  }
  func.func @transform_0(%arg0: i32) -> (i32, i32, i32) {
    %c0_i32 = arith.constant 0 : i32
    %c0_i32_0 = arith.constant 0 : i32
    %c0_i32_1 = arith.constant 0 : i32
    return %arg0, %c0_i32, %c0_i32_0 : i32, i32, i32
  }
  func.func @transform_1(%arg0: i32) -> (i32, i32) {
    %c0_i32 = arith.constant 0 : i32
    %c0_i32_0 = arith.constant 0 : i32
    %c0_i32_1 = arith.constant 0 : i32
    return %c0_i32, %c0_i32_0 : i32, i32
  }
  func.func @transform_2(%arg0: i32) -> (i32, i32) {
    %c0_i32 = arith.constant 0 : i32
    %c0_i32_0 = arith.constant 0 : i32
    %c0_i32_1 = arith.constant 0 : i32
    return %c0_i32, %c0_i32_0 : i32, i32
  }
  func.func @transform_3(%arg0: i32) -> (i32, i32, i32) {
    %c0_i32 = arith.constant 0 : i32
    %c0_i32_0 = arith.constant 0 : i32
    %c0_i32_1 = arith.constant 0 : i32
    return %arg0, %c0_i32, %c0_i32_0 : i32, i32, i32
  }
}

</mosaic_0001>

<bundles_post_ra>
// kernel: tpu_custom_call.1
= control target key start
LH: loop header
LB: loop body
LE: loop exit
PB: predicated region body
PF: predicated region fallthrough
CT: control target
= control target key end

     0   :  { %vm30_vm0 = vcmask 31744   ;;  %s857_s16 = smov 127   ;;  %v859_v11 = vmov 0.0   ;;  %s860_s17 = smov 1   ;;  %vm864_vm1 = vmmov 0   ;;  %v866_v12 = vmov 0   ;;  %s1175_s0 = inlined_call_operand.vmem [shape: bf16[2,16,4], index: 0, kind: input, shape index: {}]   ;;  %s1176_s1 = inlined_call_operand.vmem [shape: bf16[72,40], index: 1, kind: input, shape index: {}]   ;;  %s1177_s2 = inlined_call_operand.vmem [shape: f32[24,2], index: 2, kind: input, shape index: {}]   ;;  %s1178_s3 = inlined_call_operand.vmem [shape: f32[2,16,4], index: 3, kind: output, shape index: {}]  }
   0x1   :  { %v744_v0 = vld [vmem:[%s1175_s0] sm:$0xff]   ;;  %v751_v3 = vld [vmem:[%s1175_s0 + $0x8] sm:$0xff]   ;;  %s858_s0 = smov 97   ;;  %776 = vmatprep.subr.bf16.mxu0 %v859_v11  ;;  %786 = vmatprep.subr.bf16.mxu1 %v859_v11  ;;  %s861_s18 = smov 98   ;;  %v15_v15 = vlaneseq  ;;  %vm78_vm2 = vcmask 7168   ;;  %vm86_vm3 = vcmask 15360  }
   0x2   :  { %v745_v1 = vunpack.c.l.bf16 %v744_v0  ;;  %v746_v2 = vunpack.c.h.bf16 %v744_v0  ;;  %v749_v6 = vunpack.c.l.bf16 %v751_v3  ;;  %v750_v8 = vunpack.c.h.bf16 %v751_v3  ;;  %s862_s19 = smov 2   ;;  %s863_s20 = smov 31   ;;  %782 = vmatprep.mubr.msk.bf16.mxu0 %vm864_vm1, %v859_v11  ;;  %792 = vmatprep.mubr.msk.bf16.mxu1 %vm864_vm1, %v859_v11  ;;  %v70_v13 = vld [vmem:[%s1177_s2] sm:$0xff] }
   0x3   :  { %s865_s21 = smov 126   ;;  %848 = vset.pattern.permute.xlu1 %v866_v12  ;;  %s867_s22 = smov 30   ;;  %v16_v17 = vand.u32 127, %v15_v15  ;;  %vm94_vm6 = vcmask 252928   ;;  %vm102_vm8 = vcmask 244736   ;;  %vm130_vm10 = vcmask 1043456  }
   0x4   :  { %v31_v4 = vsel %vm30_vm0, %v745_v1, 0.0  ;;  %v32_v5 = vsel %vm30_vm0, %v746_v2, 0.0  ;;  %v33_v7 = vsel %vm30_vm0, %v749_v6, 0.0  ;;  %v34_v9 = vsel %vm30_vm0, %v750_v8, 0.0  ;;  %v854_v39 = vld [vmem:[%s1176_s1] sm:$0xff]  }
   0x5   :  { %35 = vxpose.xlu0.b32.start [1/4] (short) (narrow) %v31_v4, 8  ;;  %v928_v19 = vand.u32 15, %v16_v17  ;;  %vm126_vm11 = vcmask 326656   ;;  %v868_v47 = vmov 1   ;;  %v69_v6 = vld [vmem:[%s1176_s1 + $0x8] sm:$0xf] }
   0x7   :  { %vm19_vm4 = vcmp.eq.s32.totalorder %v928_v19, 1  ;;  %vm18_vm5 = vcmp.eq.s32.totalorder %v928_v19, 0  ;;  %vm21_vm7 = vcmp.eq.s32.totalorder %v928_v19, 15  ;;  %vm20_vm9 = vcmp.eq.s32.totalorder %v928_v19, 14 }
   0x9   :  { %36 = vxpose.xlu0.b32.cont [2/4] (short) (narrow) %v32_v5, 8 }
   0xd   :  { %37 = vxpose.xlu0.b32.cont [3/4] (short) (narrow) %v33_v7, 8 }
  0x11   :  { %38 = vxpose.xlu0.b32.end [4/4] (short) (narrow) %v34_v9, 8 }
  0x3a   :  { %850 = vset.pattern.permute.xlu0 %v866_v12 }
  0x85   :  { %v899_v10 = vpop.trf.xlu0 }
  0x86   :  { %88 = vrot.lane.b32.xlu0 %v899_v10, %s857_s16  ;;  %72 = vrot.lane.b32.xlu1 %v899_v10, %s858_s0 }
  0x8a   :  { %75 = vrot.lane.b32.xlu1 %v899_v10, %s860_s17 }
  0x8e   :  { %80 = vrot.lane.b32.xlu1 %v899_v10, %s861_s18 }
  0x92   :  { %83 = vrot.lane.b32.xlu1 %v899_v10, %s862_s19 }
  0x96   :  { %91 = vrot.lane.b32.xlu1 %v899_v10, %s863_s20 }
  0x9a   :  { %96 = vrot.lane.b32.xlu1 %v899_v10, %s865_s21 }
  0x9e   :  { %99 = vrot.lane.b32.xlu1 %v899_v10, %s867_s22 }
  0xa2   :  { %177 = vperm.xlu1 %848, %v70_v13  }
  0xa6   :  { %849 = vset.pattern.permute.xlu1 %v868_v47 }
  0xf8   :  { %v73_v14 = vpop.permute.xlu1 %72  ;;  %v89_v26 = vpop.permute.xlu0 %88 }
  0xfc   :  { %v76_v16 = vpop.permute.xlu1 %75 }
  0xfd   :  { %v79_v20 = vsel %vm78_vm2, %v73_v14, %v76_v16 }
  0xfe   :  { %v110_v25 = vsel %vm18_vm5, %v899_v10, %v79_v20 }
 0x100   :  { %v81_v18 = vpop.permute.xlu1 %80 }
 0x104   :  { %v84_v21 = vpop.permute.xlu1 %83 }
 0x105   :  { %v87_v22 = vsel %vm86_vm3, %v81_v18, %v84_v21 }
 0x106   :  { %v106_v23 = vsel %vm19_vm4, %v79_v20, %v87_v22 }
 0x107   :  { %v109_v24 = vsel %vm18_vm5, %v899_v10, %v106_v23 }
 0x108   :  { %v92_v27 = vpop.permute.xlu1 %91  ;;  %v118_v28 = vpack.c.bf16 %v110_v25, %v109_v24 }
 0x109   :  { %v95_v29 = vsel %vm94_vm6, %v89_v26, %v92_v27 }
 0x10a   :  { %v113_v30 = vsel %vm21_vm7, %v899_v10, %v95_v29  ;;  %777 = vmatpush3.bf16.msra.mxu0 %v118_v28 }
 0x10b   :  { %778 = vmatprep.subr.bf16.mxu0 %v859_v11  ;;  %v119_v31 = vpack.c.bf16 %v113_v30, %v899_v10 }
 0x10c   :  { %v97_v32 = vpop.permute.xlu1 %96 }
 0x10e   :  { %779 = vmatpush3.bf16.msra.mxu0 %v119_v31 }
 0x10f   :  { %780 = vmatprep.subr.bf16.mxu0 %v859_v11 }
 0x110   :  { %v100_v33 = vpop.permute.xlu1 %99 }
 0x111   :  { %v103_v34 = vsel %vm102_vm8, %v97_v32, %v100_v33 }
 0x112   :  { %v116_v35 = vsel %vm20_vm9, %v95_v29, %v103_v34  ;;  %v295_v29 = vld [vmem:[%s1177_s2 + $0x8] sm:$0xff] }
 0x113   :  { %v117_v36 = vsel %vm21_vm7, %v899_v10, %v116_v35 }
 0x114   :  { %v120_v37 = vpack.c.bf16 %v117_v36, %v117_v36 }
 0x116   :  { %v132_v38 = vsel %vm130_vm10, %v120_v37, 0 }
 0x117   :  { %781 = vmatpush3.bf16.msra.mxu0 %v132_v38 }
 0x118   :  { %796 = vmatprep.subr.bf16.mxu0 %v859_v11 }
 0x11a   :  { %783 = vmatmul.mubr.msk.bf16.vlgmr.msra.gmra.mrb[0].mxu0 %vm126_vm11, %v854_v39 }
 0x11b   :  { %802 = vmatprep.mubr.msk.bf16.mxu0 %vm864_vm1, %v859_v11 }
 0x121   :  { %v178_v40 = vpop.permute.xlu1 %177 }
 0x1ed   :  { %v168_v41 = vpop.f32.mrb[0].mxu0 }
 0x1ee   :  { %v180_v42 = vadd.f32 %v178_v40, %v168_v41  ;;  %v784_v43 = vpop.f32.mrb[1].mxu0 }
 0x1ef   :  { %v171_v44 = vpop.f32.mrb[2].mxu0 }
 0x1f0   :  { %v181_v45 = vmax.f32 %v180_v42, 0.0  ;;  %v785_v46 = vpop.f32.mrb[3].mxu0 }
 0x1f2   :  { %207 = vrot.lane.b32.xlu0 %v181_v45, %s867_s22  ;;  %183 = vrot.lane.b32.xlu1 %v181_v45, %s858_s0 }
 0x1f6   :  { %186 = vrot.lane.b32.xlu1 %v181_v45, %s860_s17 }
 0x1fa   :  { %190 = vrot.lane.b32.xlu1 %v181_v45, %s861_s18 }
 0x1fe   :  { %193 = vrot.lane.b32.xlu1 %v181_v45, %s862_s19 }
 0x202   :  { %197 = vrot.lane.b32.xlu1 %v181_v45, %s857_s16 }
 0x206   :  { %200 = vrot.lane.b32.xlu1 %v181_v45, %s863_s20 }
 0x20a   :  { %204 = vrot.lane.b32.xlu1 %v181_v45, %s865_s21 }
 0x20e   :  { %267 = vperm.xlu1 %849, %v70_v13  }
 0x264   :  { %v184_v48 = vpop.permute.xlu1 %183  ;;  %v208_v63 = vpop.permute.xlu0 %207 }
 0x268   :  { %v187_v49 = vpop.permute.xlu1 %186 }
 0x269   :  { %v189_v51 = vsel %vm78_vm2, %v184_v48, %v187_v49 }
 0x26a   :  { %v213_v56 = vsel %vm18_vm5, %v181_v45, %v189_v51 }
 0x26c   :  { %v191_v50 = vpop.permute.xlu1 %190 }
 0x270   :  { %v194_v52 = vpop.permute.xlu1 %193 }
 0x271   :  { %v196_v53 = vsel %vm86_vm3, %v191_v50, %v194_v52 }
 0x272   :  { %v211_v54 = vsel %vm19_vm4, %v189_v51, %v196_v53  ;;  %v855_v53 = vld [vmem:[%s1176_s1 + $0xc] sm:$0xff]  }
 0x273   :  { %v212_v55 = vsel %vm18_vm5, %v181_v45, %v211_v54 }
 0x274   :  { %v198_v57 = vpop.permute.xlu1 %197  ;;  %v217_v58 = vpack.c.bf16 %v213_v56, %v212_v55 }
 0x276   :  { %787 = vmatpush3.bf16.msra.mxu1 %v217_v58 }
 0x277   :  { %788 = vmatprep.subr.bf16.mxu1 %v859_v11 }
 0x278   :  { %v201_v59 = vpop.permute.xlu1 %200 }
 0x279   :  { %v203_v60 = vsel %vm94_vm6, %v198_v57, %v201_v59 }
 0x27a   :  { %v214_v61 = vsel %vm21_vm7, %v181_v45, %v203_v60 }
 0x27b   :  { %v218_v62 = vpack.c.bf16 %v214_v61, %v181_v45 }
 0x27c   :  { %v205_v0 = vpop.permute.xlu1 %204 }
 0x27d   :  { %v210_v1 = vsel %vm102_vm8, %v205_v0, %v208_v63  ;;  %789 = vmatpush3.bf16.msra.mxu1 %v218_v62 }
 0x27e   :  { %v215_v2 = vsel %vm20_vm9, %v203_v60, %v210_v1  ;;  %790 = vmatprep.subr.bf16.mxu1 %v859_v11 }
 0x27f   :  { %v216_v3 = vsel %vm21_vm7, %v181_v45, %v215_v2 }
 0x280   :  { %v219_v4 = vpack.c.bf16 %v216_v3, %v216_v3 }
 0x282   :  { %v224_v5 = vsel %vm130_vm10, %v219_v4, 0 }
 0x283   :  { %791 = vmatpush3.bf16.msra.mxu1 %v224_v5 }
 0x284   :  { %806 = vmatprep.subr.bf16.mxu1 %v859_v11 }
 0x286   :  { %793 = vmatmul.mubr.msk.bf16.vlgmr.msra.gmra.mrb[0].mxu1 %vm126_vm11, %v69_v6 }
 0x287   :  { %812 = vmatprep.mubr.msk.bf16.mxu1 %vm864_vm1, %v859_v11 }
 0x28d   :  { %v268_v8 = vpop.permute.xlu1 %267 }
 0x359   :  { %v260_v7 = vpop.f32.mrb[0].mxu1 }
 0x35a   :  { %v261_v9 = vadd.f32 %v260_v7, %v171_v44  ;;  %v794_v10 = vpop.f32.mrb[1].mxu1 }
 0x35b   :  { %v263_v13 = vpop.f32.mrb[2].mxu1 }
 0x35c   :  { %v270_v14 = vadd.f32 %v268_v8, %v261_v9  ;;  %v795_v15 = vpop.f32.mrb[3].mxu1 }
 0x35e   :  { %v271_v16 = vmax.f32 %v270_v14, 0.0 }
 0x360   :  { %276 = vrot.lane.b32.xlu1 %v271_v16, %s860_s17  ;;  %273 = vrot.lane.b32.xlu0 %v271_v16, %s858_s0 }
 0x364   :  { %284 = vrot.lane.b32.xlu1 %v271_v16, %s863_s20  ;;  %281 = vrot.lane.b32.xlu0 %v271_v16, %s857_s16 }
 0x3d2   :  { %v277_v17 = vpop.permute.xlu1 %276  ;;  %v274_v18 = vpop.permute.xlu0 %273 }
 0x3d3   :  { %v279_v20 = vsel %vm78_vm2, %v274_v18, %v277_v17 }
 0x3d4   :  { %v280_v21 = vsel %vm18_vm5, 0.0, %v279_v20 }
 0x3d5   :  { %v289_v24 = vadd.f32 %v280_v21, %v271_v16  ;;  %v294_v21 = vld [vmem:[%s1176_s1 + $0x14] sm:$0xf] }
 0x3d6   :  { %v285_v22 = vpop.permute.xlu1 %284  ;;  %v282_v23 = vpop.permute.xlu0 %281 }
 0x3d7   :  { %v287_v25 = vsel %vm94_vm6, %v282_v23, %v285_v22 }
 0x3d8   :  { %v288_v26 = vsel %vm21_vm7, 0.0, %v287_v25 }
 0x3d9   :  { %v290_v27 = vadd.f32 %v289_v24, %v288_v26 }
 0x3db   :  { %v291_v28 = vmul.f32 0.33333334, %v290_v27 }
 0x3dd   :  { %300 = vrot.lane.b32.xlu1 %v291_v28, %s860_s17  ;;  %297 = vrot.lane.b32.xlu0 %v291_v28, %s858_s0 }
 0x3e1   :  { %307 = vrot.lane.b32.xlu1 %v291_v28, %s862_s19  ;;  %304 = vrot.lane.b32.xlu0 %v291_v28, %s861_s18 }
 0x3e5   :  { %314 = vrot.lane.b32.xlu1 %v291_v28, %s863_s20  ;;  %311 = vrot.lane.b32.xlu0 %v291_v28, %s857_s16 }
 0x3e9   :  { %321 = vrot.lane.b32.xlu1 %v291_v28, %s867_s22  ;;  %318 = vrot.lane.b32.xlu0 %v291_v28, %s865_s21 }
 0x3ed   :  { %388 = vperm.xlu0 %850, %v295_v29  }
 0x3f1   :  { %851 = vset.pattern.permute.xlu0 %v868_v47 }
 0x44f   :  { %v301_v30 = vpop.permute.xlu1 %300  ;;  %v298_v31 = vpop.permute.xlu0 %297 }
 0x450   :  { %v303_v32 = vsel %vm78_vm2, %v298_v31, %v301_v30 }
 0x451   :  { %v327_v37 = vsel %vm18_vm5, %v291_v28, %v303_v32 }
 0x453   :  { %v308_v33 = vpop.permute.xlu1 %307  ;;  %v305_v34 = vpop.permute.xlu0 %304 }
 0x454   :  { %v310_v35 = vsel %vm86_vm3, %v305_v34, %v308_v33 }
 0x455   :  { %v325_v36 = vsel %vm19_vm4, %v303_v32, %v310_v35 }
 0x456   :  { %v326_v38 = vsel %vm18_vm5, %v291_v28, %v325_v36 }
 0x457   :  { %v331_v39 = vpack.c.bf16 %v327_v37, %v326_v38  ;;  %v315_v40 = vpop.permute.xlu1 %314  ;;  %v312_v41 = vpop.permute.xlu0 %311 }
 0x458   :  { %v317_v42 = vsel %vm94_vm6, %v312_v41, %v315_v40  ;;  %v506_v41 = vld [vmem:[%s1177_s2 + $0x10] sm:$0xff] }
 0x459   :  { %v328_v43 = vsel %vm21_vm7, %v291_v28, %v317_v42  ;;  %797 = vmatpush3.bf16.msra.mxu0 %v331_v39 }
 0x45a   :  { %v332_v44 = vpack.c.bf16 %v328_v43, %v291_v28  ;;  %798 = vmatprep.subr.bf16.mxu0 %v859_v11 }
 0x45b   :  { %v322_v45 = vpop.permute.xlu1 %321  ;;  %v319_v46 = vpop.permute.xlu0 %318 }
 0x45c   :  { %v324_v48 = vsel %vm102_vm8, %v319_v46, %v322_v45 }
 0x45d   :  { %v329_v49 = vsel %vm20_vm9, %v317_v42, %v324_v48  ;;  %799 = vmatpush3.bf16.msra.mxu0 %v332_v44 }
 0x45e   :  { %800 = vmatprep.subr.bf16.mxu0 %v859_v11  ;;  %v330_v50 = vsel %vm21_vm7, %v291_v28, %v329_v49 }
 0x45f   :  { %v333_v51 = vpack.c.bf16 %v330_v50, %v330_v50 }
 0x461   :  { %v343_v52 = vsel %vm130_vm10, %v333_v51, 0 }
 0x462   :  { %801 = vmatpush3.bf16.msra.mxu0 %v343_v52 }
 0x463   :  { %816 = vmatprep.subr.bf16.mxu0 %v859_v11 }
 0x465   :  { %803 = vmatmul.mubr.msk.bf16.vlgmr.msra.gmra.mrb[4].mxu0 %vm126_vm11, %v855_v53 }
 0x466   :  { %822 = vmatprep.mubr.msk.bf16.mxu0 %vm864_vm1, %v859_v11 }
 0x46c   :  { %v389_v54 = vpop.permute.xlu0 %388 }
 0x538   :  { %v379_v55 = vpop.f32.mrb[4].mxu0 }
 0x539   :  { %v391_v56 = vadd.f32 %v389_v54, %v379_v55  ;;  %v804_v57 = vpop.f32.mrb[5].mxu0 }
 0x53a   :  { %v382_v58 = vpop.f32.mrb[6].mxu0 }
 0x53b   :  { %v392_v59 = vmax.f32 %v391_v56, 0.0  ;;  %v805_v60 = vpop.f32.mrb[7].mxu0 }
 0x53d   :  { %401 = vrot.lane.b32.xlu0 %v392_v59, %s861_s18  ;;  %394 = vrot.lane.b32.xlu1 %v392_v59, %s858_s0 }
 0x541   :  { %408 = vrot.lane.b32.xlu0 %v392_v59, %s857_s16  ;;  %397 = vrot.lane.b32.xlu1 %v392_v59, %s860_s17 }
 0x545   :  { %415 = vrot.lane.b32.xlu0 %v392_v59, %s865_s21  ;;  %404 = vrot.lane.b32.xlu1 %v392_v59, %s862_s19 }
 0x549   :  { %411 = vrot.lane.b32.xlu1 %v392_v59, %s863_s20  ;;  %478 = vperm.xlu0 %851, %v295_v29  }
 0x54d   :  { %418 = vrot.lane.b32.xlu1 %v392_v59, %s867_s22  ;;  %852 = vset.pattern.permute.xlu0 %v866_v12 }
 0x5af   :  { %v395_v61 = vpop.permute.xlu1 %394  ;;  %v402_v62 = vpop.permute.xlu0 %401 }
 0x5b3   :  { %v398_v63 = vpop.permute.xlu1 %397  ;;  %v409_v3 = vpop.permute.xlu0 %408 }
 0x5b4   :  { %v400_v0 = vsel %vm78_vm2, %v395_v61, %v398_v63 }
 0x5b5   :  { %v424_v5 = vsel %vm18_vm5, %v392_v59, %v400_v0 }
 0x5b7   :  { %v405_v1 = vpop.permute.xlu1 %404  ;;  %v416_v13 = vpop.permute.xlu0 %415 }
 0x5b8   :  { %v407_v2 = vsel %vm86_vm3, %v402_v62, %v405_v1 }
 0x5b9   :  { %v422_v4 = vsel %vm19_vm4, %v400_v0, %v407_v2  ;;  %v856_v0 = vld [vmem:[%s1176_s1 + $0x18] sm:$0xff]  }
 0x5ba   :  { %v423_v6 = vsel %vm18_vm5, %v392_v59, %v422_v4 }
 0x5bb   :  { %v428_v7 = vpack.c.bf16 %v424_v5, %v423_v6  ;;  %v412_v12 = vpop.permute.xlu1 %411 }
 0x5bc   :  { %v414_v8 = vsel %vm94_vm6, %v409_v3, %v412_v12 }
 0x5bd   :  { %v425_v9 = vsel %vm21_vm7, %v392_v59, %v414_v8  ;;  %807 = vmatpush3.bf16.msra.mxu1 %v428_v7 }
 0x5be   :  { %v429_v10 = vpack.c.bf16 %v425_v9, %v392_v59  ;;  %808 = vmatprep.subr.bf16.mxu1 %v859_v11 }
 0x5bf   :  { %v419_v14 = vpop.permute.xlu1 %418 }
 0x5c0   :  { %v421_v15 = vsel %vm102_vm8, %v416_v13, %v419_v14 }
 0x5c1   :  { %v426_v16 = vsel %vm20_vm9, %v414_v8, %v421_v15  ;;  %809 = vmatpush3.bf16.msra.mxu1 %v429_v10 }
 0x5c2   :  { %810 = vmatprep.subr.bf16.mxu1 %v859_v11  ;;  %v427_v17 = vsel %vm21_vm7, %v392_v59, %v426_v16 }
 0x5c3   :  { %v430_v18 = vpack.c.bf16 %v427_v17, %v427_v17 }
 0x5c5   :  { %v435_v20 = vsel %vm130_vm10, %v430_v18, 0 }
 0x5c6   :  { %811 = vmatpush3.bf16.msra.mxu1 %v435_v20 }
 0x5c7   :  { %826 = vmatprep.subr.bf16.mxu1 %v859_v11 }
 0x5c8   :  { %v479_v23 = vpop.permute.xlu0 %478 }
 0x5c9   :  { %813 = vmatmul.mubr.msk.bf16.vlgmr.msra.gmra.mrb[4].mxu1 %vm126_vm11, %v294_v21 }
 0x5ca   :  { %832 = vmatprep.mubr.msk.bf16.mxu1 %vm864_vm1, %v859_v11 }
 0x69c   :  { %v471_v22 = vpop.f32.mrb[4].mxu1 }
 0x69d   :  { %v472_v24 = vadd.f32 %v471_v22, %v382_v58  ;;  %v814_v25 = vpop.f32.mrb[5].mxu1 }
 0x69e   :  { %v474_v26 = vpop.f32.mrb[6].mxu1 }
 0x69f   :  { %v481_v27 = vadd.f32 %v479_v23, %v472_v24  ;;  %v815_v28 = vpop.f32.mrb[7].mxu1 }
 0x6a1   :  { %v482_v29 = vmax.f32 %v481_v27, 0.0 }
 0x6a3   :  { %492 = vrot.lane.b32.xlu0 %v482_v29, %s857_s16  ;;  %484 = vrot.lane.b32.xlu1 %v482_v29, %s858_s0 }
 0x6a7   :  { %487 = vrot.lane.b32.xlu1 %v482_v29, %s860_s17 }
 0x6ab   :  { %495 = vrot.lane.b32.xlu1 %v482_v29, %s863_s20 }
 0x715   :  { %v485_v30 = vpop.permute.xlu1 %484  ;;  %v493_v34 = vpop.permute.xlu0 %492 }
 0x719   :  { %v488_v31 = vpop.permute.xlu1 %487 }
 0x71a   :  { %v490_v32 = vsel %vm78_vm2, %v485_v30, %v488_v31 }
 0x71b   :  { %v491_v33 = vsel %vm18_vm5, 0.0, %v490_v32  ;;  %v505_v32 = vld [vmem:[%s1176_s1 + $0x20] sm:$0xf] }
 0x71c   :  { %v500_v36 = vadd.f32 %v491_v33, %v482_v29 }
 0x71d   :  { %v496_v35 = vpop.permute.xlu1 %495 }
 0x71e   :  { %v498_v37 = vsel %vm94_vm6, %v493_v34, %v496_v35 }
 0x71f   :  { %v499_v38 = vsel %vm21_vm7, 0.0, %v498_v37 }
 0x720   :  { %v501_v39 = vadd.f32 %v500_v36, %v499_v38 }
 0x722   :  { %v502_v40 = vmul.f32 0.33333334, %v501_v39 }
 0x724   :  { %511 = vrot.lane.b32.xlu1 %v502_v40, %s860_s17  ;;  %508 = vrot.lane.b32.xlu0 %v502_v40, %s858_s0 }
 0x728   :  { %518 = vrot.lane.b32.xlu1 %v502_v40, %s862_s19  ;;  %515 = vrot.lane.b32.xlu0 %v502_v40, %s861_s18 }
 0x72c   :  { %525 = vrot.lane.b32.xlu1 %v502_v40, %s863_s20  ;;  %522 = vrot.lane.b32.xlu0 %v502_v40, %s857_s16 }
 0x730   :  { %532 = vrot.lane.b32.xlu1 %v502_v40, %s867_s22  ;;  %529 = vrot.lane.b32.xlu0 %v502_v40, %s865_s21 }
 0x734   :  { %599 = vperm.xlu0 %852, %v506_v41  }
 0x738   :  { %853 = vset.pattern.permute.xlu0 %v868_v47 }
 0x796   :  { %v512_v42 = vpop.permute.xlu1 %511  ;;  %v509_v43 = vpop.permute.xlu0 %508 }
 0x797   :  { %v514_v44 = vsel %vm78_vm2, %v509_v43, %v512_v42 }
 0x798   :  { %v538_v50 = vsel %vm18_vm5, %v502_v40, %v514_v44 }
 0x79a   :  { %v519_v45 = vpop.permute.xlu1 %518  ;;  %v516_v46 = vpop.permute.xlu0 %515 }
 0x79b   :  { %v521_v48 = vsel %vm86_vm3, %v516_v46, %v519_v45 }
 0x79c   :  { %v536_v49 = vsel %vm19_vm4, %v514_v44, %v521_v48 }
 0x79d   :  { %v537_v51 = vsel %vm18_vm5, %v502_v40, %v536_v49 }
 0x79e   :  { %v542_v52 = vpack.c.bf16 %v538_v50, %v537_v51  ;;  %v526_v53 = vpop.permute.xlu1 %525  ;;  %v523_v47 = vpop.permute.xlu0 %522 }
 0x79f   :  { %v528_v54 = vsel %vm94_vm6, %v523_v47, %v526_v53 }
 0x7a0   :  { %v539_v55 = vsel %vm21_vm7, %v502_v40, %v528_v54  ;;  %817 = vmatpush3.bf16.msra.mxu0 %v542_v52 }
 0x7a1   :  { %v543_v56 = vpack.c.bf16 %v539_v55, %v502_v40  ;;  %818 = vmatprep.subr.bf16.mxu0 %v859_v11 }
 0x7a2   :  { %v533_v57 = vpop.permute.xlu1 %532  ;;  %v530_v58 = vpop.permute.xlu0 %529 }
 0x7a3   :  { %v535_v59 = vsel %vm102_vm8, %v530_v58, %v533_v57 }
 0x7a4   :  { %v540_v60 = vsel %vm20_vm9, %v528_v54, %v535_v59  ;;  %819 = vmatpush3.bf16.msra.mxu0 %v543_v56 }
 0x7a5   :  { %820 = vmatprep.subr.bf16.mxu0 %v859_v11  ;;  %v541_v61 = vsel %vm21_vm7, %v502_v40, %v540_v60 }
 0x7a6   :  { %v544_v62 = vpack.c.bf16 %v541_v61, %v541_v61 }
 0x7a8   :  { %v554_v63 = vsel %vm130_vm10, %v544_v62, 0 }
 0x7a9   :  { %821 = vmatpush3.bf16.msra.mxu0 %v554_v63 }
 0x7ac   :  { %823 = vmatmul.mubr.msk.bf16.vlgmr.msra.gmra.mrb[8].mxu0 %vm126_vm11, %v856_v0 }
 0x7b3   :  { %v600_v1 = vpop.permute.xlu0 %599 }
 0x87f   :  { %v590_v2 = vpop.f32.mrb[8].mxu0 }
 0x880   :  { %v602_v3 = vadd.f32 %v600_v1, %v590_v2  ;;  %v824_v4 = vpop.f32.mrb[9].mxu0 }
 0x881   :  { %v593_v5 = vpop.f32.mrb[10].mxu0 }
 0x882   :  { %v603_v6 = vmax.f32 %v602_v3, 0.0  ;;  %v825_v7 = vpop.f32.mrb[11].mxu0 }
 0x884   :  { %612 = vrot.lane.b32.xlu0 %v603_v6, %s861_s18  ;;  %605 = vrot.lane.b32.xlu1 %v603_v6, %s858_s0 }
 0x888   :  { %619 = vrot.lane.b32.xlu0 %v603_v6, %s857_s16  ;;  %608 = vrot.lane.b32.xlu1 %v603_v6, %s860_s17 }
 0x88c   :  { %626 = vrot.lane.b32.xlu0 %v603_v6, %s865_s21  ;;  %615 = vrot.lane.b32.xlu1 %v603_v6, %s862_s19 }
 0x890   :  { %622 = vrot.lane.b32.xlu1 %v603_v6, %s863_s20  ;;  %689 = vperm.xlu0 %853, %v506_v41  }
 0x894   :  { %629 = vrot.lane.b32.xlu1 %v603_v6, %s867_s22 }
 0x8f6   :  { %v606_v12 = vpop.permute.xlu1 %605  ;;  %v613_v8 = vpop.permute.xlu0 %612 }
 0x8fa   :  { %v609_v9 = vpop.permute.xlu1 %608  ;;  %v620_v15 = vpop.permute.xlu0 %619 }
 0x8fb   :  { %v611_v10 = vsel %vm78_vm2, %v606_v12, %v609_v9 }
 0x8fc   :  { %v635_v17 = vsel %vm18_vm5, %v603_v6, %v611_v10 }
 0x8fe   :  { %v616_v13 = vpop.permute.xlu1 %615  ;;  %v627_v25 = vpop.permute.xlu0 %626 }
 0x8ff   :  { %v618_v14 = vsel %vm86_vm3, %v613_v8, %v616_v13 }
 0x900   :  { %v633_v16 = vsel %vm19_vm4, %v611_v10, %v618_v14 }
 0x901   :  { %v634_v18 = vsel %vm18_vm5, %v603_v6, %v633_v16 }
 0x902   :  { %v639_v20 = vpack.c.bf16 %v635_v17, %v634_v18  ;;  %v623_v21 = vpop.permute.xlu1 %622 }
 0x903   :  { %v625_v22 = vsel %vm94_vm6, %v620_v15, %v623_v21 }
 0x904   :  { %v636_v23 = vsel %vm21_vm7, %v603_v6, %v625_v22  ;;  %827 = vmatpush3.bf16.msra.mxu1 %v639_v20 }
 0x905   :  { %v640_v24 = vpack.c.bf16 %v636_v23, %v603_v6  ;;  %828 = vmatprep.subr.bf16.mxu1 %v859_v11 }
 0x906   :  { %v630_v26 = vpop.permute.xlu1 %629 }
 0x907   :  { %v632_v27 = vsel %vm102_vm8, %v627_v25, %v630_v26 }
 0x908   :  { %v637_v28 = vsel %vm20_vm9, %v625_v22, %v632_v27  ;;  %829 = vmatpush3.bf16.msra.mxu1 %v640_v24 }
 0x909   :  { %830 = vmatprep.subr.bf16.mxu1 %v859_v11  ;;  %v638_v29 = vsel %vm21_vm7, %v603_v6, %v637_v28 }
 0x90a   :  { %v641_v30 = vpack.c.bf16 %v638_v29, %v638_v29 }
 0x90c   :  { %v646_v31 = vsel %vm130_vm10, %v641_v30, 0 }
 0x90d   :  { %831 = vmatpush3.bf16.msra.mxu1 %v646_v31 }
 0x90f   :  { %v690_v34 = vpop.permute.xlu0 %689 }
 0x910   :  { %833 = vmatmul.mubr.msk.bf16.vlgmr.msra.gmra.mrb[8].mxu1 %vm126_vm11, %v505_v32 }
 0x9e3   :  { %v682_v33 = vpop.f32.mrb[8].mxu1 }
 0x9e4   :  { %v683_v35 = vadd.f32 %v682_v33, %v593_v5  ;;  %v834_v36 = vpop.f32.mrb[9].mxu1 }
 0x9e5   :  { %v685_v37 = vpop.f32.mrb[10].mxu1 }
 0x9e6   :  { %v692_v38 = vadd.f32 %v690_v34, %v683_v35  ;;  %v835_v11 = vpop.f32.mrb[11].mxu1 }
 0x9e8   :  { %v693_v39 = vmax.f32 %v692_v38, 0.0 }
 0x9ea   :  { %694 = vxpose.xlu1.b32.start.end [1/1] (short) (narrow) %v693_v39, 32 }
 0xa6a   :  { %v710_v19 = vpop.trf.xlu1 }
 0xa6b   :  { %726 = vst.msk [vmem:[%s1178_s3] sm:$0xff] %vm30_vm0, %v710_v19 }
 0xa6e   :  { %v711_v40 = vpop.trf.xlu1 }
 0xa6f   :  { %727 = vst.msk [vmem:[%s1178_s3 + $0x8] sm:$0xff] %vm30_vm0, %v711_v40 }
 0xa72   :  { %v712_v41 = vpop.trf.xlu1 }
 0xa73   :  { %728 = vst.msk [vmem:[%s1178_s3 + $0x10] sm:$0xff] %vm30_vm0, %v712_v41 }
 0xa76   :  { %v713_v42 = vpop.trf.xlu1 }
 0xa77   :  { %729 = vst.msk [vmem:[%s1178_s3 + $0x18] sm:$0xff] %vm30_vm0, %v713_v42 }

</bundles_post_ra>
